<compile_context>
chip_gen: v7x
topology: tpu7x:2x2x1
jax: 0.10.0
libtpu: 0.0.40
codegen_flags: <defaults>
</compile_context>

<pallas_src>
import jax
import jax.numpy as jnp
from jax.experimental import pallas as pl
from jax.experimental.pallas import tpu as pltpu

LANE = 128


def _round_up(a: int, b: int) -> int:
    return ((a + b - 1) // b) * b


def _pick_block_bytes() -> int:
    """Per-generation block size (bytes of input per grid step)."""
    try:
        kind = jax.devices()[0].device_kind.lower()
    except Exception:
        return 4 * 1024 * 1024
    if "v7" in kind or "tpu7" in kind:
        return 8 * 1024 * 1024      # ~1.3 us of HBM time per step at 3.2 TB/s
    if "v6" in kind:
        return 4 * 1024 * 1024
    if "v5" in kind:
        return 3 * 1024 * 1024
    return 4 * 1024 * 1024


def _mish_kernel(x_ref, o_ref):
    x = x_ref[...].astype(jnp.float32)
    # Numerically stable softplus: max(x, 0) + log(1 + exp(-|x|)).
    # exp / log / tanh are EUP pushes; kernel stays HBM-bound.
    sp = jnp.maximum(x, 0.0) + jnp.log(1.0 + jnp.exp(-jnp.abs(x)))
    o_ref[...] = (x * jnp.tanh(sp)).astype(o_ref.dtype)


def _mish_jnp(x: jax.Array) -> jax.Array:
    """Plain-JAX Mish (used only for the <128-element ragged tail)."""
    xf = x.astype(jnp.float32)
    return (xf * jnp.tanh(jax.nn.softplus(xf))).astype(x.dtype)


def mish(x: jax.Array) -> jax.Array:
    """Elementwise Mish.  Flattens to a lane-dense [rows, 128] slab; any
    n % 128 == 0 tensor is zero-copy (no pad, no crop)."""
    orig_shape = x.shape
    dtype = x.dtype
    n = x.size
    if n == 0:
        return x

    itemsize = jnp.dtype(dtype).itemsize
    # Sublane packing: f32 -> 8 rows, bf16 -> 16 rows, int8/fp8 -> 32 rows.
    row_align = 8 * max(1, 4 // itemsize)

    x_flat = x.reshape(-1)
    n_main = (n // LANE) * LANE

    if n_main == 0:
        # Fewer than 128 elements: kernel launch not worth it.
        return _mish_jnp(x_flat).reshape(orig_shape)

    rows = n_main // LANE
    block_bytes = _pick_block_bytes()
    target_rows = max(row_align,
                      _round_up(block_bytes // (LANE * itemsize), row_align))

    if rows <= row_align:
        # Single full-array block (exempt from the 8-row alignment rule).
        tile_rows = rows
    else:
        # Aim for >= ~4 grid steps (>= 2 per TC on v7x) so the DMA pipeline
        # overlaps, capped at the per-generation block size; ragged last
        # block is masked by Pallas.
        tile_rows = max(row_align,
                        min(target_rows, _round_up(pl.cdiv(rows, 4), row_align)))

    grid = (pl.cdiv(rows, tile_rows),)
    vmem_limit = max(32 * 1024 * 1024, 4 * block_bytes + 8 * 1024 * 1024)

    if n_main == n:
        x2d = x_flat.reshape(rows, LANE)        # zero-copy fast path
    else:
        x2d = x_flat[:n_main].reshape(rows, LANE)

    out2d = pl.pallas_call(
        _mish_kernel,
        out_shape=jax.ShapeDtypeStruct((rows, LANE), dtype),
        grid=grid,
        in_specs=[pl.BlockSpec((tile_rows, LANE), lambda i: (i, 0))],
        out_specs=pl.BlockSpec((tile_rows, LANE), lambda i: (i, 0)),
        compiler_params=pltpu.CompilerParams(
            dimension_semantics=("parallel",),
            vmem_limit_bytes=vmem_limit,
        ),
        cost_estimate=pl.CostEstimate(
            flops=10 * n_main,
            transcendentals=3 * n_main,
            bytes_accessed=2 * n_main * itemsize,
        ),
    )(x2d)

    if n_main == n:
        return out2d.reshape(orig_shape)
    tail_out = _mish_jnp(x_flat[n_main:])
    return jnp.concatenate([out2d.reshape(-1), tail_out]).reshape(orig_shape)


def _mish_ref(x):
    xf = x.astype(jnp.float32)
    return (xf * jnp.tanh(jax.nn.softplus(xf))).astype(x.dtype)


if __name__ == "__main__":
    key = jax.random.PRNGKey(0)

    # Main case: NCHW activation, hits the zero-copy fast path (n % 128 == 0).
    x = jax.random.normal(key, (2, 4, 16, 16), dtype=jnp.float32)
    out = mish(x)
    jax.block_until_ready(out)
    ref = _mish_ref(x)
    assert out.shape == x.shape and out.dtype == x.dtype
    assert jnp.allclose(out, ref, atol=1e-5, rtol=1e-5), "f32 fast-path mismatch"

    # Awkward size (n % 128 != 0): exercises the prefix + jnp-tail path.
    x2 = jax.random.normal(jax.random.PRNGKey(1), (3, 5, 7, 11), dtype=jnp.float32) * 4.0
    out2 = mish(x2)
    jax.block_until_ready(out2)
    assert jnp.allclose(out2, _mish_ref(x2), atol=1e-5, rtol=1e-5), "ragged-path mismatch"

    # bf16: tile rows are a multiple of 16 (packed dtype); computed in f32 internally.
    x3 = jax.random.normal(jax.random.PRNGKey(2), (2, 4, 16, 16), dtype=jnp.bfloat16)
    out3 = mish(x3)
    jax.block_until_ready(out3)
    assert out3.dtype == jnp.bfloat16
    assert jnp.allclose(out3.astype(jnp.float32), _mish_ref(x3).astype(jnp.float32),
                        atol=2e-2, rtol=2e-2), "bf16 mismatch"

    print("KERNEL_OK")
</pallas_src>

<mosaic_0001>
module attributes {stable_mosaic.version = 11 : i64} {
  func.func @_mish_kernel(%arg0: i32, %arg1: memref<8x128xf32, #tpu.memory_space<vmem>>, %arg2: memref<8x128xf32, #tpu.memory_space<vmem>>) attributes {dimension_semantics = [#tpu.dimension_semantics<parallel>], iteration_bounds = array<i64: 2>, scalar_prefetch = 0 : i64, scratch_operands = 0 : i64, tpu.core_type = #tpu.core_type<tc>, window_params = [{transform_indices = @transform_0, window_bounds = array<i64: 8, 128>}, {transform_indices = @transform_1, window_bounds = array<i64: 8, 128>}]} {
    %c0 = arith.constant 0 : index
    %c0_0 = arith.constant 0 : index
    %0 = vector.load %arg1[%c0, %c0_0] : memref<8x128xf32, #tpu.memory_space<vmem>>, vector<8x128xf32>
    %cst = arith.constant 0.000000e+00 : f32
    %1 = vector.broadcast %cst : f32 to vector<8x128xf32>
    %2 = arith.maximumf %0, %1 : vector<8x128xf32>
    %3 = math.absf %0 : vector<8x128xf32>
    %cst_1 = arith.constant 0.000000e+00 : f32
    %4 = vector.broadcast %cst_1 : f32 to vector<8x128xf32>
    %5 = arith.subf %4, %3 : vector<8x128xf32>
    %6 = math.exp %5 : vector<8x128xf32>
    %cst_2 = arith.constant 1.000000e+00 : f32
    %7 = vector.broadcast %cst_2 : f32 to vector<8x128xf32>
    %8 = arith.addf %7, %6 : vector<8x128xf32>
    %9 = math.log %8 : vector<8x128xf32>
    %10 = arith.addf %2, %9 : vector<8x128xf32>
    %11 = math.tanh %10 : vector<8x128xf32>
    %12 = arith.mulf %0, %11 : vector<8x128xf32>
    %c0_3 = arith.constant 0 : index
    %c0_4 = arith.constant 0 : index
    %13 = vector.load %arg2[%c0_3, %c0_4] : memref<8x128xf32, #tpu.memory_space<vmem>>, vector<8x128xf32>
    tpu.vector_store %arg2[%c0_3, %c0_4], %12 {strides = array<i32>} : memref<8x128xf32, #tpu.memory_space<vmem>>, vector<8x128xf32>,
    return
  }
  func.func @transform_0(%arg0: i32) -> (i32, i32) {
    %c0_i32 = arith.constant 0 : i32
    %c0_i32_0 = arith.constant 0 : i32
    return %arg0, %c0_i32 : i32, i32
  }
  func.func @transform_1(%arg0: i32) -> (i32, i32) {
    %c0_i32 = arith.constant 0 : i32
    %c0_i32_0 = arith.constant 0 : i32
    return %arg0, %c0_i32 : i32, i32
  }
}

</mosaic_0001>

<bundles_post_ra>
// kernel: tpu_custom_call.1
= control target key start
LH: loop header
LB: loop body
LE: loop exit
PB: predicated region body
PF: predicated region fallthrough
CT: control target
= control target key end

     0   :  { %6 = vsyncpa [#allocation3], 0  ;;  %s564_s0 = inlined_call_operand.hbm [shape: f32[16,128], index: 0, kind: input, shape index: {}]   ;;  %s565_s1 = inlined_call_operand.hbm [shape: f32[16,128], index: 1, kind: output, shape index: {}]  }
   0x1   :  { %8 = vsyncpa [#allocation3 + $0x1], 0 }
   0x2   :  { %9 = vsyncpa [#allocation4], 0 }
   0x3   :  { %11 = vsyncpa [#allocation4 + $0x1], 0  ;;  %s403_s6 = smov 0   ;;  %s405_s7 = smov 0  }
   0x4   :  { %s407_s8 = smov 0   ;;  %s409_s9 = smov 0  }
   0x5 LB: > { %s424_s10 = sadd.s32 4294967295, %s389_s9   ;;  %s229_s11 = sadd.s32 4294967294, %s389_s9   ;;  %s389_s9 = sphi %s409_s9, %s580_s9   ;;  %s385_s8 = sphi %s407_s8, %s579_s8   ;;  %s381_s7 = sphi %s405_s7, %s578_s7   ;;  %s377_s6 = sphi %s403_s6, %s577_s6  }
   0x6   : > { %s428_s12 = sadd.s32 1, %s389_s9   ;;  %s24_s13 = sadd.s32 1, %s385_s8 }
   0x7   : > { %s21_s14 = ssub.s32 %s389_s9, %s428_s12  ;;  %p31_p0 = scmp.ne.s32.totalorder %s385_s8, %s381_s7 }
   0x8   : > { %p22_p1 = scmp.eq.s32.totalorder %s21_s14, 0  ;;  %p32_p2 = scmp.eq.s32.totalorder %s389_s9, 0 }
   0x9   : > { %p37_p3 = scmp.ne.s32.totalorder %s381_s7, %s377_s6  ;;  %p38_p4 = scmp.eq.s32.totalorder %s424_s10, 0 }
   0xa   : > { %s440_s15 = scalar_select %p22_p1, %s385_s8, %s24_s13  }
   0xb   : > { %p442_p5 = por %p32_p2, %p31_p0  ;;  %p446_p6 = por %p38_p4, %p37_p3 }
   0xc   : > { %p61_p7 = scmp.eq.s32.totalorder %s424_s10, 1  ;;  %p67_p8 = scmp.eq.s32.totalorder %s229_s11, 1 }
   0xd   : > { %p253_p10 = scmp.lt.s32.totalorder %s389_s9, 2  ;;  %s87_s20 = sand.u32 1, %s385_s8  }
   0xe   : > { %p453_p11 = por %p61_p7, %p31_p0  ;;  %p457_p12 = por %p67_p8, %p37_p3 }
   0xf   : > { %s233_s21 = sshll.u32 %s389_s9, 7  ;;  %s232_s22 = sshll.u32 %s87_s20, 3 }
  0x10   : > { %s569_s18 = scalar_select %p453_p11, 1, 0 }
  0x11   : > { %s570_s19 = scalar_select %p457_p12, 1, 0 }
  0x12   : > { %s466_s25 = scalar_lea.hbm %s564_s0, %s233_s21  ;;  %s91_s26 = scalar_lea.vmem [#allocation2], %s232_s22 }
  0x13   : > { %s98_s27 = sshll.u32 %s91_s26, 4  ;;  %p470_p13 = pnand %p253_p10, %p442_p5  ;;  %s474_s27 = int_to_ptr.vmem [resolvable:$true] %s98_s27 }
  0x14   : > { %s88_s29 = scalar_lea.sflag [#allocation3], %s87_s20  ;;  %s293_s30 = scalar_lea.hbm %s466_s25, 128 }
  0x15   : > { %p294_p2 = scmp.ne.s32.totalorder %s466_s25, %s293_s30  ;;  %p295_p3 = pneg %p470_p13 }
  0x16   : > { %s298_s4 = scalar_lea.hbm %s564_s0, 256  ;;  %p299_p5 = scmp.lt.u32.totalorder %s466_s25, %s564_s0 }
  0x17   : > { %p296_p4 = pnand %p295_p3, %p294_p2  ;;  %p300_p8 = scmp.lt.u32.totalorder %s298_s4, %s293_s30 }
  0x18   : > { %p302_p9 = scmp.lt.u32.totalorder %s293_s30, %s466_s25 }
  0x19   : > { %p297_p7 = pneg %p296_p4  ;;  %p301_p10 = por %p300_p8, %p299_p5 }
  0x1b   : > { %p303_p0 = por %p302_p9, %p301_p10 }
  0x1d   : > { %p304_p1 = pnand %p303_p0, %p297_p7 }
  0x1f   : > { %307 = shalt.err (!%p304_p1)
}
  0x20   : > { %s308_s13 = scalar_lea.vmem %s474_s27, 128  ;;  %s391_s14 = smov [#allocation2]  }
  0x21   : > { %p309_p2 = scmp.ne.s32.totalorder %s474_s27, %s308_s13  ;;  %s313_s16 = sshll.u32 %s391_s14, 4  ;;  %s314_s16 = int_to_ptr.vmem [resolvable:$false] %s313_s16 }
  0x22   : > { %s315_s20 = scalar_lea.vmem %s314_s16, 256  ;;  %p316_p11 = scmp.lt.s32.totalorder %s474_s27, %s314_s16 }
  0x23   : > { %p311_p4 = pnand %p309_p2, %p295_p3  ;;  %p317_p5 = scmp.lt.s32.totalorder %s315_s20, %s308_s13 }
  0x25   : > { %p312_p12 = pneg %p311_p4  ;;  %p318_p8 = por %p317_p5, %p316_p11 }
  0x27   : > { %p319_p9 = pnand %p318_p8, %p312_p12 }
  0x29   : > { %322 = shalt.err (!%p319_p9)
}
  0x2a   : > { %248 = dma.hbm_to_vmem [thread:$0]  (!%p470_p13), %s466_s25, 128, %s474_s27, %s88_s29  }
  0x2b   : > { %p572_p0 = scmp.lt.s32.totalorder %s389_s9, 3  ;;  %p573_p1 = scmp.ge.s32.totalorder %s389_s9, 1 }
  0x2d   : > { %p104_p3 = pnand %p573_p1, %p572_p0 }
  0x2e   : > { %s508_s21 = sand.u32 (!%p104_p3), 1, %s381_s7  }
  0x2f   : > { %107 = sbr.rel (%p104_p3) target bundleno = 117 (0x75), region = 24  ;;  %s235_s22 = sshll.u32 (!%p104_p3), %s508_s21, 3 }
  0x30   : > { %s110_s23 = scalar_lea.sflag (!%p104_p3), [#allocation3], %s508_s21  ;;  %s113_s24 = scalar_lea.vmem (!%p104_p3), [#allocation2], %s235_s22 }
  0x36   : > { %368 = dma.done.wait (%p446_p6), %s110_s23, 128  }
  0x37   : > { %370 = vsyncadd (%p446_p6), %s110_s23, 4294967168  ;;  %v132_v0 = vld [vmem:[%s113_s24] sm:$0xff]  ;;  %s131_s25 = scalar_lea.vmem [#allocation5], %s235_s22  ;;  %s238_s17 = sshll.u32 %s424_s10, 7 }
  0x38   : > { %v134_v1 = vand.u32 2147483647, %v132_v0  ;;  %v133_v6 = vmax.f32 %v132_v0, 0.0  ;;  %s159_s26 = sshll.u32 %s131_s25, 4  ;;  %s522_s29 = scalar_lea.hbm %s565_s1, %s238_s17  ;;  %s517_s26 = int_to_ptr.vmem [resolvable:$true] %s159_s26 }
  0x39   : > { %s146_s30 = scalar_lea.sflag [#allocation4], %s508_s21  ;;  %s323_s2 = scalar_lea.vmem %s517_s26, 128 }
  0x3a   : > { %v135_v2 = vsub.f32 0.0, %v134_v1  ;;  %p324_p6 = scmp.ne.s32.totalorder %s517_s26, %s323_s2  ;;  %p574_p11 = scmp.ne.s32.totalorder %s569_s18, 0 }
  0x3b   : > { %s392_s10 = smov [#allocation5]  }
  0x3c   : > { %v136_v3 = vmul.f32 1.442695, %v135_v2  ;;  %p325_p12 = pnand %p324_p6, %p574_p11  ;;  %s327_s3 = sshll.u32 %s392_s10, 4  ;;  %s328_s3 = int_to_ptr.vmem [resolvable:$false] %s327_s3 }
  0x3d   : > { %s329_s4 = scalar_lea.vmem %s328_s3, 256  ;;  %p330_p7 = scmp.lt.s32.totalorder %s517_s26, %s328_s3 }
  0x3e   : > { %287 = vpow2.f32 %v136_v3  ;;  %p326_p13 = pneg %p325_p12  ;;  %p331_p10 = scmp.lt.s32.totalorder %s329_s4, %s323_s2 }
  0x40   : > { %p332_p2 = por %p331_p10, %p330_p7 }
  0x42   : > { %p333_p4 = pnand %p332_p2, %p326_p13 }
  0x48   : > { %v288_v4 = vpop.eup %287 }
  0x49   : > { %v138_v5 = vadd.f32 1.0, %v288_v4 }
  0x4b   : > { %289 = vlog2.f32 %v138_v5 }
  0x55   : > { %v290_v7 = vpop.eup %289 }
  0x56   : > { %v140_v8 = vmul.f32 0.6931472, %v290_v7 }
  0x58   : > { %v141_v9 = vadd.f32 %v140_v8, %v133_v6 }
  0x5a   : > { %291 = vtanh.f32 %v141_v9 }
  0x64   : > { %v292_v10 = vpop.eup %291 }
  0x65   : > { %v143_v11 = vmul.f32 %v292_v10, %v132_v0 }
  0x67   : > { %144 = vst [vmem:[%s131_s25] sm:$0xff] %v143_v11 }
  0x68   : > { %336 = shalt.err (!%p333_p4)
}
  0x69   : > { %s337_s5 = scalar_lea.hbm %s522_s29, 128  ;;  %s341_s14 = scalar_lea.hbm %s565_s1, 256 }
  0x6a   : > { %p338_p5 = scmp.ne.s32.totalorder %s522_s29, %s337_s5  ;;  %p342_p0 = scmp.lt.u32.totalorder %s522_s29, %s565_s1 }
  0x6b   : > { %p343_p1 = scmp.lt.u32.totalorder %s341_s14, %s337_s5  ;;  %p345_p6 = scmp.lt.u32.totalorder %s337_s5, %s522_s29 }
  0x6c   : > { %p339_p8 = pnand %p338_p5, %p574_p11 }
  0x6d   : > { %p344_p3 = por %p343_p1, %p342_p0 }
  0x6e   : > { %p340_p9 = pneg %p339_p8 }
  0x6f   : > { %p346_p12 = por %p345_p6, %p344_p3 }
  0x71   : > { %p347_p13 = pnand %p346_p12, %p340_p9 }
  0x73   : > { %350 = shalt.err (!%p347_p13)
}
  0x74   : > { %243 = dma.vmem_to_hbm [thread:$0]  (%p574_p11), %s517_s26, 128, %s522_s29, %s146_s30  }
  0x75 PF: > { %s171_s21 = sand.u32 1, %s377_s6   ;;  %p575_p7 = scmp.ne.s32.totalorder %s570_s19, 0 }
  0x76   : > { %p576_p10 = scmp.ge.s32.totalorder %s389_s9, 2  ;;  %s172_s22 = scalar_lea.sflag [#allocation4], %s171_s21 }
  0x78   : > { %p250_p2 = pnand %p576_p10, %p575_p7 }
  0x7a   : > { %372 = dma.done.wait (!%p250_p2), %s172_s22, 128  }
  0x7b   : > { %374 = vsyncadd (!%p250_p2), %s172_s22, 4294967168  ;;  %p14_p4 = scmp.ge.s32.totalorder %s428_s12, 4   ;;  %s577_s6 = smov %s381_s7 }
  0x7c   : > { %s578_s7 = smov %s385_s8  ;;  %s579_s8 = smov %s440_s15 }
  0x7d   : > { %s580_s9 = smov %s428_s12  ;;  %16 = sbr.rel (!%p14_p4) target bundleno = 5 (0x5), region = 69 }
  0x84   :  { %177 = vsyncpa [#allocation3], 1 }
  0x85   :  { %179 = vsyncpa [#allocation3 + $0x1], 1 }
  0x86   :  { %180 = vsyncpa [#allocation4], 1 }
  0x87   :  { %182 = vsyncpa [#allocation4 + $0x1], 1 }

</bundles_post_ra>
